<compile_context>
chip_gen: v6e
topology: v6e:2x2x1
jax: 0.10.0
libtpu: 0.0.40
codegen_flags: <defaults>
</compile_context>

<pallas_src>
import functools

import jax
import jax.numpy as jnp
from jax.experimental import pallas as pl
from jax.experimental.pallas import tpu as pltpu


def _round_up(x, m):
    return ((x + m - 1) // m) * m


def _rmsnorm_kernel(x_ref, w_ref, o_ref, *, eps, chunk_rows, row_align,
                    cast_y_to_weight_dtype):
    # Hoist the (small) weight load + broadcast out of the chunk loop: JAX does
    # not CSE broadcast_in_dim, so doing it per chunk would re-materialize it.
    w = jnp.broadcast_to(w_ref[...], (chunk_rows, w_ref.shape[1]))
    tile_rows = x_ref.shape[0]
    n_chunks = pl.cdiv(tile_rows, chunk_rows)

    def process(r0):
        # Per-chunk fp32 math keeps intermediates vreg/VMEM-tiny.
        x = x_ref[pl.ds(r0, chunk_rows), :].astype(jnp.float32)
        variance = jnp.mean(x * x, axis=-1, keepdims=True)
        y = x * jax.lax.rsqrt(variance + eps)            # fp32 (torch promotion)
        if cast_y_to_weight_dtype:
            y = y.astype(w.dtype)                        # round to half weight dtype
        o_ref[pl.ds(r0, chunk_rows), :] = (w * y).astype(o_ref.dtype)

    if n_chunks == 1:
        process(0)
    else:
        # Last chunk may overlap the previous one when tile_rows is not an
        # exact multiple of chunk_rows; the re-computed rows write identical
        # values, so this is idempotent and never indexes out of bounds.
        last_start = tile_rows - chunk_rows

        def body(c, carry):
            r0 = jnp.minimum(c * chunk_rows, last_start)
            process(pl.multiple_of(r0, row_align))
            return carry

        jax.lax.fori_loop(0, n_chunks, body, 0, unroll=bool(n_chunks <= 8))


def llama_rmsnorm(hidden_states, weight, eps=1e-6, *, tile_rows=None):
    """hidden_states: (..., hidden); weight: (hidden,). Matches LlamaRMSNorm."""
    orig_shape = hidden_states.shape
    hidden = orig_shape[-1]
    x2d = hidden_states.reshape(-1, hidden)
    rows = x2d.shape[0]
    w2d = weight.reshape(1, hidden)

    half_dtypes = (jnp.dtype(jnp.float16), jnp.dtype(jnp.bfloat16))
    cast_y_to_weight_dtype = jnp.dtype(weight.dtype) in half_dtypes
    # Output dtype follows the module: half weight -> half result; otherwise
    # the fp32-promoted product is returned.
    out_dtype = weight.dtype if cast_y_to_weight_dtype else jnp.float32

    in_bytes = jnp.dtype(x2d.dtype).itemsize
    out_bytes = jnp.dtype(out_dtype).itemsize
    w_bytes = jnp.dtype(weight.dtype).itemsize
    bytes_per_row = hidden * (in_bytes + out_bytes)

    # Native sublane packing: 8 rows for 32-bit, 16 for 16-bit, 32 for 8-bit.
    row_align = max(8, 32 // min(in_bytes, out_bytes))

    # Row chunk processed per inner-loop iteration: keep each fp32 temporary
    # around <= 0.5 MiB so compute intermediates never balloon VMEM usage.
    chunk_rows = max(row_align,
                     ((512 * 1024) // (hidden * 4) // row_align) * row_align)
    chunk_rows = min(chunk_rows, 512)

    rows_pad = _round_up(rows, row_align)

    if tile_rows is None:
        # ~4-8 MiB of in+out per grid step (near-roofline already, VMEM-cheap).
        budget = 8 * 1024 * 1024
        tile_rows = max(chunk_rows, budget // max(bytes_per_row, 1))
        tile_rows = min(tile_rows, 8 * chunk_rows)   # bounds the unrolled loop
    tile_rows = max(row_align, (int(tile_rows) // row_align) * row_align)
    tile_rows = min(tile_rows, rows_pad)
    chunk_rows = min(chunk_rows, tile_rows)

    # Prefer >= 4 (and even) grid steps when rows allow, so v7x's two
    # TensorCores (parallel row axis) stay balanced and the pipeline can ramp.
    n_steps = pl.cdiv(rows, tile_rows)
    if n_steps > 1:
        target = max(n_steps, min(4, pl.cdiv(rows_pad, row_align)))
        if target % 2:
            target += 1
        new_tile = max(row_align, _round_up(pl.cdiv(rows, target), row_align))
        tile_rows = min(tile_rows, new_tile)
        chunk_rows = min(chunk_rows, tile_rows)

    # VMEM accounting: double-buffered in+out tiles, resident weight (plus its
    # broadcast), and the per-chunk fp32 temporaries (x_f32, x*x, y, w_bcast).
    fp32_temp_bytes = 4 * chunk_rows * hidden * 4
    need = (2 * tile_rows * bytes_per_row
            + 2 * hidden * max(w_bytes, 4)
            + fp32_temp_bytes)
    vmem_cap = 64 * 1024 * 1024          # v7x physical VMEM = smallest of all gens
    try:
        vmem_cap = int(getattr(pltpu.get_tpu_info(), "vmem_capacity_bytes",
                               vmem_cap))
    except Exception:
        pass
    vmem_limit_bytes = int(max(need + 4 * 1024 * 1024, 16 * 1024 * 1024))
    vmem_limit_bytes = int(min(vmem_limit_bytes,
                               max(vmem_cap - 8 * 1024 * 1024, need)))

    cost = pl.CostEstimate(
        flops=int(5 * rows * hidden),
        transcendentals=int(rows),
        bytes_accessed=int(rows * hidden * (in_bytes + out_bytes)
                           + hidden * w_bytes),
    )

    out = pl.pallas_call(
        functools.partial(
            _rmsnorm_kernel,
            eps=float(eps),
            chunk_rows=int(chunk_rows),
            row_align=int(row_align),
            cast_y_to_weight_dtype=bool(cast_y_to_weight_dtype),
        ),
        out_shape=jax.ShapeDtypeStruct((rows, hidden), out_dtype),
        grid_spec=pltpu.PrefetchScalarGridSpec(
            num_scalar_prefetch=0,
            grid=(pl.cdiv(rows, tile_rows),),
            in_specs=[
                pl.BlockSpec((tile_rows, hidden), lambda i: (i, 0)),
                pl.BlockSpec((1, hidden), lambda i: (0, 0)),
            ],
            out_specs=pl.BlockSpec((tile_rows, hidden), lambda i: (i, 0)),
        ),
        compiler_params=pltpu.CompilerParams(
            dimension_semantics=("parallel",),
            vmem_limit_bytes=vmem_limit_bytes,
        ),
        cost_estimate=cost,
    )(x2d, w2d)

    return out.reshape(orig_shape)


def rmsnorm_reference(x, weight, eps=1e-6):
    """Pure-JAX transcription of the PyTorch module (same dtype rules)."""
    xf = x.astype(jnp.float32)
    variance = jnp.mean(xf * xf, axis=-1, keepdims=True)
    y = xf * jax.lax.rsqrt(variance + eps)   # torch promotes x * fp32 -> fp32
    if jnp.dtype(weight.dtype) in (jnp.dtype(jnp.float16), jnp.dtype(jnp.bfloat16)):
        y = y.astype(weight.dtype)
    return weight * y


if __name__ == "__main__":
    key = jax.random.PRNGKey(0)
    k1, k2, k3 = jax.random.split(key, 3)

    # --- primary case: fp32 x, fp32 weight (module default: torch.ones) ------
    batch, seq, hidden = 2, 8, 32
    x = jax.random.normal(k1, (batch, seq, hidden), dtype=jnp.float32)
    weight = jnp.ones((hidden,), dtype=jnp.float32)

    out = jax.block_until_ready(llama_rmsnorm(x, weight, eps=1e-6))
    ref = rmsnorm_reference(x, weight, eps=1e-6)
    assert out.shape == x.shape and out.dtype == ref.dtype
    assert jnp.allclose(out, ref, atol=1e-5, rtol=1e-5), \
        float(jnp.max(jnp.abs(out - ref)))

    # --- half-precision weight: y is rounded to bf16 before the multiply -----
    w_bf16 = (jnp.ones((hidden,), jnp.float32)
              + 0.1 * jax.random.normal(k2, (hidden,), jnp.float32)).astype(jnp.bfloat16)
    out_h = jax.block_until_ready(llama_rmsnorm(x, w_bf16, eps=1e-6))
    ref_h = rmsnorm_reference(x, w_bf16, eps=1e-6)
    assert out_h.dtype == jnp.bfloat16 and ref_h.dtype == jnp.bfloat16
    assert jnp.allclose(out_h.astype(jnp.float32), ref_h.astype(jnp.float32),
                        atol=2e-2, rtol=2e-2)

    # --- ragged grid (rows % tile_rows != 0) with a lane-aligned hidden ------
    x_r = jax.random.normal(k3, (5, 8, 128), dtype=jnp.float32)   # rows = 40
    w_r = jnp.ones((128,), dtype=jnp.float32)
    out_r = jax.block_until_ready(llama_rmsnorm(x_r, w_r, eps=1e-6, tile_rows=16))
    ref_r = rmsnorm_reference(x_r, w_r, eps=1e-6)
    assert jnp.allclose(out_r, ref_r, atol=1e-5, rtol=1e-5)

    print("KERNEL_OK")
</pallas_src>

<mosaic_0001>
module attributes {stable_mosaic.version = 11 : i64} {
  func.func @_rmsnorm_kernel(%arg0: i32, %arg1: memref<16x32xf32, #tpu.memory_space<vmem>>, %arg2: memref<1x32xf32, #tpu.memory_space<vmem>>, %arg3: memref<16x32xf32, #tpu.memory_space<vmem>>) attributes {dimension_semantics = [#tpu.dimension_semantics<parallel>], iteration_bounds = array<i64: 1>, scalar_prefetch = 0 : i64, scratch_operands = 0 : i64, tpu.core_type = #tpu.core_type<tc>, window_params = [{transform_indices = @transform_0, window_bounds = array<i64: 16, 32>}, {pipeline_mode = #tpu.pipeline_mode<synchronous>, transform_indices = @transform_1, window_bounds = array<i64: 1, 32>}, {transform_indices = @transform_2, window_bounds = array<i64: 16, 32>}]} {
    %c0 = arith.constant 0 : index
    %c0_0 = arith.constant 0 : index
    %0 = vector.load %arg2[%c0, %c0_0] : memref<1x32xf32, #tpu.memory_space<vmem>>, vector<1x32xf32>
    %1 = vector.shape_cast %0 : vector<1x32xf32> to vector<1x32xf32>
    %2 = vector.broadcast %1 : vector<1x32xf32> to vector<16x32xf32>
    %c0_1 = arith.constant 0 : index
    %c0_2 = arith.constant 0 : index
    %3 = vector.load %arg1[%c0_1, %c0_2] : memref<16x32xf32, #tpu.memory_space<vmem>>, vector<16x32xf32>
    %4 = arith.mulf %3, %3 : vector<16x32xf32>
    %cst = arith.constant dense<0.000000e+00> : vector<16xf32>
    %5 = vector.multi_reduction <add>, %4, %cst [1] : vector<16x32xf32> to vector<16xf32>
    %6 = vector.shape_cast %5 : vector<16xf32> to vector<16x1xf32>
    %cst_3 = arith.constant 3.200000e+01 : f32
    %7 = vector.broadcast %cst_3 : f32 to vector<16x1xf32>
    %8 = arith.divf %6, %7 : vector<16x1xf32>
    %cst_4 = arith.constant 9.99999997E-7 : f32
    %9 = vector.broadcast %cst_4 : f32 to vector<16x1xf32>
    %10 = arith.addf %8, %9 : vector<16x1xf32>
    %11 = math.rsqrt %10 : vector<16x1xf32>
    %12 = vector.broadcast %11 : vector<16x1xf32> to vector<16x32xf32>
    %13 = arith.mulf %3, %12 : vector<16x32xf32>
    %14 = arith.mulf %2, %13 : vector<16x32xf32>
    %c0_5 = arith.constant 0 : index
    %c0_6 = arith.constant 0 : index
    %15 = vector.load %arg3[%c0_5, %c0_6] : memref<16x32xf32, #tpu.memory_space<vmem>>, vector<16x32xf32>
    tpu.vector_store %arg3[%c0_5, %c0_6], %14 {strides = array<i32>} : memref<16x32xf32, #tpu.memory_space<vmem>>, vector<16x32xf32>,
    return
  }
  func.func @transform_0(%arg0: i32) -> (i32, i32) {
    %c0_i32 = arith.constant 0 : i32
    %c0_i32_0 = arith.constant 0 : i32
    return %arg0, %c0_i32 : i32, i32
  }
  func.func @transform_1(%arg0: i32) -> (i32, i32) {
    %c0_i32 = arith.constant 0 : i32
    %c0_i32_0 = arith.constant 0 : i32
    %c0_i32_1 = arith.constant 0 : i32
    return %c0_i32, %c0_i32_0 : i32, i32
  }
  func.func @transform_2(%arg0: i32) -> (i32, i32) {
    %c0_i32 = arith.constant 0 : i32
    %c0_i32_0 = arith.constant 0 : i32
    return %arg0, %c0_i32 : i32, i32
  }
}

</mosaic_0001>

<bundles_post_ra>
// kernel: tpu_custom_call.1
= control target key start
LH: loop header
LB: loop body
LE: loop exit
PB: predicated region body
PF: predicated region fallthrough
CT: control target
= control target key end

     0   :  { %7 = vsyncpa [#allocation3], 0  ;;  %s165_s0 = inlined_call_operand.hbm [shape: f32[16,32], index: 0, kind: input, shape index: {}]   ;;  %s166_s1 = inlined_call_operand.vmem [shape: f32[1,32], index: 1, kind: input, shape index: {}]   ;;  %s167_s2 = inlined_call_operand.hbm [shape: f32[16,32], index: 2, kind: output, shape index: {}]  }
   0x1   :  { %8 = vsyncpa [#allocation4], 0  ;;  %s127_s9 = smov [#allocation2]  }
   0x2   :  { %s14_s10 = sshll.u32 %s127_s9, 4  ;;  %s15_s10 = int_to_ptr.vmem [resolvable:$true] %s14_s10 }
   0x3   :  { %s91_s11 = scalar_lea.vmem %s15_s10, 256  ;;  %p96_p1 = scmp.lt.s32.totalorder %s15_s10, %s15_s10 }
   0x4   :  { %p92_p0 = scmp.ne.s32.totalorder %s15_s10, %s91_s11  ;;  %p97_p2 = scmp.lt.s32.totalorder %s91_s11, %s91_s11 }
   0x6   :  { %p98_p3 = por %p97_p2, %p96_p1 }
   0x8   :  { %p99_p4 = pnand %p98_p3, %p92_p0 }
   0xa   :  { %102 = shalt.err (!%p99_p4)
}
   0xb   :  { %s128_s12 = smov 128   ;;  %s129_s13 = smov 8  }
   0xc   :  { %20 = dma.hbm_to_vmem [thread:$0]  %s165_s0, 256, %s15_s10, [#allocation3], %s128_s12, %s128_s12, %s129_s13  }
   0xd   :  { %123 = dma.done.wait [#allocation3], 256  }
   0xe   :  { %124 = vsyncadd [#allocation3], 4294967040  ;;  %v33_v0 = vld [vmem:[#allocation2] sm:$0xff]  ;;  %vm37_vm0 = vcmask 261120   ;;  %v34_v1 = vld [vmem:[#allocation2 + $0x8] sm:$0xff]  ;;  %s130_s17 = smov [#allocation5]  }
   0xf   :  { %v35_v2 = vmul.f32 %v33_v0, %v33_v0  ;;  %v36_v3 = vmul.f32 %v34_v1, %v34_v1  ;;  %v74_v13 = vld [vmem:[%s166_s1] ss:$0 sm:$0xff]  ;;  %s62_s18 = sshll.u32 %s130_s17, 4  ;;  %s63_s18 = int_to_ptr.vmem [resolvable:$true] %s62_s18 }
  0x10   :  { %s103_s19 = scalar_lea.vmem %s63_s18, 256  ;;  %p108_p6 = scmp.lt.s32.totalorder %s63_s18, %s63_s18 }
  0x11   :  { %v38_v4 = vsel %vm37_vm0, %v35_v2, 0.0  ;;  %v41_v5 = vsel %vm37_vm0, %v36_v3, 0.0  ;;  %p104_p5 = scmp.ne.s32.totalorder %s63_s18, %s103_s19  ;;  %p109_p7 = scmp.lt.s32.totalorder %s103_s19, %s103_s19 }
  0x12   :  { %39 = vadd.xlane.f32.xlu0 %v38_v4 }
  0x13   :  { %p110_p8 = por %p109_p7, %p108_p6 }
  0x15   :  { %p111_p9 = pnand %p110_p8, %p104_p5 }
  0x16   :  { %42 = vadd.xlane.f32.xlu0 %v41_v5 }
  0x9b   :  { %v40_v6 = vpop.xlane.xlu0 %39 }
  0x9c   :  { %v45_v7 = vmul.f32 0.03125, %v40_v6 }
  0x9e   :  { %v47_v8 = vadd.f32 1e-06, %v45_v7 }
  0x9f   :  { %v43_v9 = vpop.xlane.xlu0 %42 }
  0xa0   :  { %79 = vrsqrt.f32 %v47_v8  ;;  %v46_v10 = vmul.f32 0.03125, %v43_v9 }
  0xa2   :  { %v48_v11 = vadd.f32 1e-06, %v46_v10 }
  0xa4   :  { %81 = vrsqrt.f32 %v48_v11 }
  0xad   :  { %v80_v12 = vpop.eup %79 }
  0xae   :  { %v51_v14 = vmul.f32 %v80_v12, %v33_v0 }
  0xb0   :  { %v53_v15 = vmul.f32 %v74_v13, %v51_v14 }
  0xb1   :  { %v82_v16 = vpop.eup %81 }
  0xb2   :  { %v52_v17 = vmul.f32 %v82_v16, %v34_v1  ;;  %55 = vst.msk [vmem:[#allocation5] sm:$0xff] %vm37_vm0, %v53_v15 }
  0xb4   :  { %v54_v18 = vmul.f32 %v74_v13, %v52_v17 }
  0xb6   :  { %56 = vst.msk [vmem:[#allocation5 + $0x8] sm:$0xff] %vm37_vm0, %v54_v18 }
  0xb7   :  { %114 = shalt.err (!%p111_p9)
}
  0xb8   :  { %68 = dma.vmem_to_hbm [thread:$0]  %s63_s18, 256, %s167_s2, [#allocation4], %s128_s12, %s128_s12, %s129_s13  }
  0xb9   :  { %125 = dma.done.wait [#allocation4], 256  }
  0xba   :  { %126 = vsyncadd [#allocation4], 4294967040 }
  0xbb   :  { %72 = vsyncpa [#allocation3], 1 }
  0xbc   :  { %73 = vsyncpa [#allocation4], 1 }

</bundles_post_ra>
